<compile_context>
chip_gen: v7x
topology: tpu7x:2x2x1
jax: 0.10.0
libtpu: 0.0.40
codegen_flags: <defaults>
</compile_context>

<pallas_src>
import functools

import jax
import jax.numpy as jnp
from jax import lax
from jax.experimental import pallas as pl
from jax.experimental.pallas import tpu as pltpu


def _round_channels(c: int) -> int:
    """Smallest padded channel count that divides 8 or is a multiple of 8."""
    if c >= 8:
        return ((c + 7) // 8) * 8
    for v in (1, 2, 4, 8):
        if c <= v:
            return v
    raise AssertionError


def _choose_slabs_per_block(n_slabs: int, slab_bytes: int) -> int:
    """~512 KiB of activations per grid step; keep grid >= 2 for v7x megacore."""
    target = 512 * 1024
    sb = max(1, min(target // slab_bytes, 8))        # cap the in-kernel unroll
    if n_slabs >= 2:
        sb = min(sb, (n_slabs + 1) // 2)             # leave >= 2 grid steps
    return int(max(1, min(sb, n_slabs)))


def _prepare_masks(H: int, W: int, HWp: int) -> jax.Array:
    """(9, HWp) per-tap validity masks over the flattened (lane-padded) image.

    Row t = (dh+1)*3 + (dw+1); mask[t, p] == 1 iff the source pixel
    (h+dh, w+dw) of output pixel p = h*W + w lies inside the image.  Positions
    p >= H*W are lane padding and are never read by a valid tap.
    """
    p = jnp.arange(HWp, dtype=jnp.int32)
    row = p // W
    col = p % W
    rows = []
    for dh in (-1, 0, 1):
        vh = (row + dh >= 0) & (row + dh < H)
        for dw in (-1, 0, 1):
            vw = (col + dw >= 0) & (col + dw < W)
            rows.append((vh & vw).astype(jnp.float32))
    return jnp.stack(rows, axis=0)                    # (9, HWp)


def _prepare_weight(w: jax.Array, C: int, Cp: int, pk: int) -> jax.Array:
    """torch (co, ci, kh, kw) -> (pk*Cp, 9*pk*Cp) im2col weight.

    Columns are tap-major, then image-major, then ci; the matrix is block
    diagonal across the pk packed images (each image mixes only its own
    channels).  Built once per call in the wrapper (hoisted out of the kernel).
    """
    w = w.astype(jnp.float32)
    if Cp != C:
        w = jnp.pad(w, ((0, Cp - C), (0, Cp - C), (0, 0), (0, 0)))
    w_taps = jnp.transpose(w, (2, 3, 0, 1)).reshape(9, Cp, Cp)   # [t, co, ci]
    eye = jnp.eye(pk, dtype=jnp.float32)
    wbig = jnp.einsum("tac,ij->iatjc", w_taps, eye)              # (pk,Cp,9,pk,Cp)
    return wbig.reshape(pk * Cp, 9 * pk * Cp)


def _conv3x3(act, wmat, masks, *, W: int):
    """3x3 conv, stride 1, pad 1, no bias, on a packed (CC, HWp) activation.

    act   : (CC, HWp) f32, CC = pk*Cp images-packed-on-sublanes activation.
    wmat  : (CC, 9*CC) f32 block-diagonal im2col weight.
    masks : (9, HWp) f32 per-tap validity masks.
    """
    CC, HWp = act.shape
    taps = []
    t = 0
    for dh in (-1, 0, 1):
        for dw in (-1, 0, 1):
            off = dh * W + dw
            if off == 0:
                shifted = act                         # center tap: no roll/mask
            else:
                # result[p] = act[(p + off) mod HWp]; invalid wraps are masked.
                shifted = pltpu.roll(act, (-off) % HWp, axis=1)
            if dh == 0 and dw == 0:
                taps.append(shifted)
            else:
                taps.append(shifted * masks[t:t + 1, :])
            t += 1
    # Sublane-aligned im2col (each piece is CC rows, CC % 8 == 0) -> one MXU
    # matmul per conv.  For C % 16 == 0 production shapes, cast xcol/wmat to
    # bf16 here (keep preferred_element_type=f32); kept f32 for the 1e-4 test.
    xcol = jnp.concatenate(taps, axis=0)              # (9*CC, HWp)
    return jnp.dot(wmat, xcol, preferred_element_type=jnp.float32)


def _resnet_block_kernel(x_ref, w1_ref, w2_ref, masks_ref, out_ref, *, W, Sb):
    # x_ref/out_ref : (Sb, CC, HWp) block of Sb image-slabs
    # w*_ref        : (CC, 9*CC)    constant index_map -> VMEM resident
    # masks_ref     : (9, HWp)      constant index_map -> VMEM resident
    w1 = w1_ref[...]
    w2 = w2_ref[...]
    masks = masks_ref[...]
    for s in range(Sb):                               # short static unroll
        x = x_ref[s].astype(jnp.float32)              # (CC, HWp)
        h1 = jnp.maximum(_conv3x3(x, w1, masks, W=W), 0.0)
        h2 = _conv3x3(h1, w2, masks, W=W)
        out_ref[s] = jnp.maximum(h2 + x, 0.0).astype(out_ref.dtype)


@jax.jit
def resnet_block(x_nchw: jax.Array, w1: jax.Array, w2: jax.Array) -> jax.Array:
    """ResNetBlock forward. x_nchw: (N, C, H, W); w1, w2: (C, C, 3, 3) torch OIHW."""
    N, C, H, W = x_nchw.shape
    assert w1.shape == (C, C, 3, 3) and w2.shape == (C, C, 3, 3)

    HW = H * W
    HWp = ((HW + 127) // 128) * 128                   # lane-dense spatial axis
    Cp = _round_channels(C)                           # padded channel count
    pk = 8 // Cp if Cp < 8 else 1                     # images packed per slab
    CC = pk * Cp                                      # sublane rows per slab

    n_slabs = -(-N // pk)
    Sb = _choose_slabs_per_block(n_slabs, CC * HWp * 4)
    n_blocks = -(-n_slabs // Sb)
    n_slabs_pad = n_blocks * Sb
    N_pad = n_slabs_pad * pk

    # NCHW is already channels-major: flatten spatial, zero-pad (images,
    # channels, lanes) as needed.  Zero pads never pollute valid outputs:
    # valid taps only read positions < H*W, and padded channels/images have
    # zero weights/inputs.
    x_flat = x_nchw.reshape(N, C, HW).astype(jnp.float32)
    pads = ((0, N_pad - N), (0, Cp - C), (0, HWp - HW))
    if any(p[1] for p in pads):
        x_flat = jnp.pad(x_flat, pads)
    x_slabs = x_flat.reshape(n_slabs_pad, CC, HWp)

    w1m = _prepare_weight(w1, C, Cp, pk)
    w2m = _prepare_weight(w2, C, Cp, pk)
    masks = _prepare_masks(H, W, HWp)

    kernel = functools.partial(_resnet_block_kernel, W=W, Sb=Sb)
    out = pl.pallas_call(
        kernel,
        out_shape=jax.ShapeDtypeStruct((n_slabs_pad, CC, HWp), jnp.float32),
        grid_spec=pltpu.PrefetchScalarGridSpec(
            num_scalar_prefetch=0,
            grid=(n_blocks,),
            in_specs=[
                pl.BlockSpec((Sb, CC, HWp), lambda n: (n, 0, 0)),
                pl.BlockSpec((CC, 9 * CC), lambda n: (0, 0)),
                pl.BlockSpec((CC, 9 * CC), lambda n: (0, 0)),
                pl.BlockSpec((9, HWp), lambda n: (0, 0)),
            ],
            out_specs=pl.BlockSpec((Sb, CC, HWp), lambda n: (n, 0, 0)),
        ),
        compiler_params=pltpu.CompilerParams(
            dimension_semantics=("parallel",)),
    )(x_slabs, w1m, w2m, masks)

    out = out.reshape(N_pad, Cp, HWp)[:N, :C, :HW]
    return out.reshape(N, C, H, W).astype(x_nchw.dtype)


def _reference(x_nchw, w1, w2):
    """Pure-JAX reference matching PyTorch semantics (NCHW conv, pad=1, no bias)."""
    dn = lax.conv_dimension_numbers(x_nchw.shape, w1.shape, ("NCHW", "OIHW", "NCHW"))
    out = lax.conv_general_dilated(x_nchw, w1, (1, 1), ((1, 1), (1, 1)),
                                   dimension_numbers=dn)
    out = jnp.maximum(out, 0.0)
    out = lax.conv_general_dilated(out, w2, (1, 1), ((1, 1), (1, 1)),
                                   dimension_numbers=dn)
    return jnp.maximum(out + x_nchw, 0.0)


def _run_case(key, N, C, H, W):
    k_x, k_w1, k_w2 = jax.random.split(key, 3)
    x = jax.random.normal(k_x, (N, C, H, W), dtype=jnp.float32)
    fan_in = C * 3 * 3
    w1 = jax.random.uniform(k_w1, (C, C, 3, 3), jnp.float32,
                            minval=-1.0, maxval=1.0) / jnp.sqrt(fan_in)
    w2 = jax.random.uniform(k_w2, (C, C, 3, 3), jnp.float32,
                            minval=-1.0, maxval=1.0) / jnp.sqrt(fan_in)
    out = jax.block_until_ready(resnet_block(x, w1, w2))
    ref = jax.block_until_ready(_reference(x, w1, w2))
    assert out.shape == (N, C, H, W)
    assert jnp.allclose(out, ref, rtol=1e-4, atol=1e-4), \
        f"mismatch vs reference at shape {(N, C, H, W)}"


if __name__ == "__main__":
    key = jax.random.PRNGKey(0)
    keys = jax.random.split(key, 3)
    # Primary demo shape implied by the module (num_filters=4): 2 images packed
    # per 8-sublane slab, HW=256 already lane-dense, grid=(1,).
    _run_case(keys[0], 2, 4, 16, 16)
    # C % 8 == 0: unpacked im2col MXU path (previously unexercised), grid=(2,).
    _run_case(keys[1], 2, 8, 16, 16)
    # Odd batch + non-128-multiple spatial: exercises image/lane zero-padding.
    _run_case(keys[2], 3, 4, 10, 10)
    print("KERNEL_OK")
</pallas_src>

<mosaic_0001>
module attributes {stable_mosaic.version = 11 : i64} {
  func.func @_resnet_block_kernel(%arg0: i32, %arg1: memref<1x8x256xf32, #tpu.memory_space<vmem>>, %arg2: memref<8x72xf32, #tpu.memory_space<vmem>>, %arg3: memref<8x72xf32, #tpu.memory_space<vmem>>, %arg4: memref<9x256xf32, #tpu.memory_space<vmem>>, %arg5: memref<1x8x256xf32, #tpu.memory_space<vmem>>) attributes {dimension_semantics = [#tpu.dimension_semantics<parallel>], iteration_bounds = array<i64: 1>, scalar_prefetch = 0 : i64, scratch_operands = 0 : i64, tpu.core_type = #tpu.core_type<tc>, window_params = [{transform_indices = @transform_0, window_bounds = array<i64: 1, 8, 256>}, {pipeline_mode = #tpu.pipeline_mode<synchronous>, transform_indices = @transform_1, window_bounds = array<i64: 8, 72>}, {pipeline_mode = #tpu.pipeline_mode<synchronous>, transform_indices = @transform_2, window_bounds = array<i64: 8, 72>}, {pipeline_mode = #tpu.pipeline_mode<synchronous>, transform_indices = @transform_3, window_bounds = array<i64: 9, 256>}, {transform_indices = @transform_4, window_bounds = array<i64: 1, 8, 256>}]} {
    %c0 = arith.constant 0 : index
    %c0_0 = arith.constant 0 : index
    %0 = vector.load %arg2[%c0, %c0_0] : memref<8x72xf32, #tpu.memory_space<vmem>>, vector<8x72xf32>
    %c0_1 = arith.constant 0 : index
    %c0_2 = arith.constant 0 : index
    %1 = vector.load %arg3[%c0_1, %c0_2] : memref<8x72xf32, #tpu.memory_space<vmem>>, vector<8x72xf32>
    %c0_3 = arith.constant 0 : index
    %c0_4 = arith.constant 0 : index
    %2 = vector.load %arg4[%c0_3, %c0_4] : memref<9x256xf32, #tpu.memory_space<vmem>>, vector<9x256xf32>
    %c0_5 = arith.constant 0 : index
    %c0_6 = arith.constant 0 : index
    %c0_7 = arith.constant 0 : index
    %3 = vector.load %arg1[%c0_5, %c0_6, %c0_7] : memref<1x8x256xf32, #tpu.memory_space<vmem>>, vector<1x8x256xf32>
    %4 = vector.shape_cast %3 : vector<1x8x256xf32> to vector<8x256xf32>
    %c17_i32 = arith.constant 17 : i32
    %5 = tpu.dynamic_rotate %4 by %c17_i32 dim 1 : vector<8x256xf32>, i32 -> vector<8x256xf32>
    %6 = vector.extract_strided_slice %2 {offsets = [0, 0], sizes = [1, 256], strides = [1, 1]} : vector<9x256xf32> to vector<1x256xf32>
    %7 = vector.broadcast %6 : vector<1x256xf32> to vector<8x256xf32>
    %8 = arith.mulf %5, %7 : vector<8x256xf32>
    %c16_i32 = arith.constant 16 : i32
    %9 = tpu.dynamic_rotate %4 by %c16_i32 dim 1 : vector<8x256xf32>, i32 -> vector<8x256xf32>
    %10 = vector.extract_strided_slice %2 {offsets = [1, 0], sizes = [1, 256], strides = [1, 1]} : vector<9x256xf32> to vector<1x256xf32>
    %11 = vector.broadcast %10 : vector<1x256xf32> to vector<8x256xf32>
    %12 = arith.mulf %9, %11 : vector<8x256xf32>
    %c15_i32 = arith.constant 15 : i32
    %13 = tpu.dynamic_rotate %4 by %c15_i32 dim 1 : vector<8x256xf32>, i32 -> vector<8x256xf32>
    %14 = vector.extract_strided_slice %2 {offsets = [2, 0], sizes = [1, 256], strides = [1, 1]} : vector<9x256xf32> to vector<1x256xf32>
    %15 = vector.broadcast %14 : vector<1x256xf32> to vector<8x256xf32>
    %16 = arith.mulf %13, %15 : vector<8x256xf32>
    %c1_i32 = arith.constant 1 : i32
    %17 = tpu.dynamic_rotate %4 by %c1_i32 dim 1 : vector<8x256xf32>, i32 -> vector<8x256xf32>
    %18 = vector.extract_strided_slice %2 {offsets = [3, 0], sizes = [1, 256], strides = [1, 1]} : vector<9x256xf32> to vector<1x256xf32>
    %19 = vector.broadcast %18 : vector<1x256xf32> to vector<8x256xf32>
    %20 = arith.mulf %17, %19 : vector<8x256xf32>
    %c255_i32 = arith.constant 255 : i32
    %21 = tpu.dynamic_rotate %4 by %c255_i32 dim 1 : vector<8x256xf32>, i32 -> vector<8x256xf32>
    %22 = vector.extract_strided_slice %2 {offsets = [5, 0], sizes = [1, 256], strides = [1, 1]} : vector<9x256xf32> to vector<1x256xf32>
    %23 = vector.broadcast %22 : vector<1x256xf32> to vector<8x256xf32>
    %24 = arith.mulf %21, %23 : vector<8x256xf32>
    %c241_i32 = arith.constant 241 : i32
    %25 = tpu.dynamic_rotate %4 by %c241_i32 dim 1 : vector<8x256xf32>, i32 -> vector<8x256xf32>
    %26 = vector.extract_strided_slice %2 {offsets = [6, 0], sizes = [1, 256], strides = [1, 1]} : vector<9x256xf32> to vector<1x256xf32>
    %27 = vector.broadcast %26 : vector<1x256xf32> to vector<8x256xf32>
    %28 = arith.mulf %25, %27 : vector<8x256xf32>
    %c240_i32 = arith.constant 240 : i32
    %29 = tpu.dynamic_rotate %4 by %c240_i32 dim 1 : vector<8x256xf32>, i32 -> vector<8x256xf32>
    %30 = vector.extract_strided_slice %2 {offsets = [7, 0], sizes = [1, 256], strides = [1, 1]} : vector<9x256xf32> to vector<1x256xf32>
    %31 = vector.broadcast %30 : vector<1x256xf32> to vector<8x256xf32>
    %32 = arith.mulf %29, %31 : vector<8x256xf32>
    %c239_i32 = arith.constant 239 : i32
    %33 = tpu.dynamic_rotate %4 by %c239_i32 dim 1 : vector<8x256xf32>, i32 -> vector<8x256xf32>
    %34 = vector.extract_strided_slice %2 {offsets = [8, 0], sizes = [1, 256], strides = [1, 1]} : vector<9x256xf32> to vector<1x256xf32>
    %35 = vector.broadcast %34 : vector<1x256xf32> to vector<8x256xf32>
    %36 = arith.mulf %33, %35 : vector<8x256xf32>
    %37 = tpu.concatenate %8, %12, %16, %20, %4, %24, %28, %32, %36 in 0 : vector<8x256xf32>, vector<8x256xf32>, vector<8x256xf32>, vector<8x256xf32>, vector<8x256xf32>, vector<8x256xf32>, vector<8x256xf32>, vector<8x256xf32>, vector<8x256xf32> -> vector<72x256xf32>
    %cst = arith.constant dense<0.000000e+00> : vector<8x256xf32>
    %38 = tpu.matmul %0, %37, %cst {dimension_numbers = #tpu.dot_dimension_numbers<[1], [0], [0], [1], [0, 0, 1, 1], [], []>} : vector<8x72xf32>, vector<72x256xf32>, vector<8x256xf32> -> vector<8x256xf32>
    %cst_8 = arith.constant 0.000000e+00 : f32
    %39 = vector.broadcast %cst_8 : f32 to vector<8x256xf32>
    %40 = arith.maximumf %38, %39 : vector<8x256xf32>
    %c17_i32_9 = arith.constant 17 : i32
    %41 = tpu.dynamic_rotate %40 by %c17_i32_9 dim 1 : vector<8x256xf32>, i32 -> vector<8x256xf32>
    %42 = vector.extract_strided_slice %2 {offsets = [0, 0], sizes = [1, 256], strides = [1, 1]} : vector<9x256xf32> to vector<1x256xf32>
    %43 = vector.broadcast %42 : vector<1x256xf32> to vector<8x256xf32>
    %44 = arith.mulf %41, %43 : vector<8x256xf32>
    %c16_i32_10 = arith.constant 16 : i32
    %45 = tpu.dynamic_rotate %40 by %c16_i32_10 dim 1 : vector<8x256xf32>, i32 -> vector<8x256xf32>
    %46 = vector.extract_strided_slice %2 {offsets = [1, 0], sizes = [1, 256], strides = [1, 1]} : vector<9x256xf32> to vector<1x256xf32>
    %47 = vector.broadcast %46 : vector<1x256xf32> to vector<8x256xf32>
    %48 = arith.mulf %45, %47 : vector<8x256xf32>
    %c15_i32_11 = arith.constant 15 : i32
    %49 = tpu.dynamic_rotate %40 by %c15_i32_11 dim 1 : vector<8x256xf32>, i32 -> vector<8x256xf32>
    %50 = vector.extract_strided_slice %2 {offsets = [2, 0], sizes = [1, 256], strides = [1, 1]} : vector<9x256xf32> to vector<1x256xf32>
    %51 = vector.broadcast %50 : vector<1x256xf32> to vector<8x256xf32>
    %52 = arith.mulf %49, %51 : vector<8x256xf32>
    %c1_i32_12 = arith.constant 1 : i32
    %53 = tpu.dynamic_rotate %40 by %c1_i32_12 dim 1 : vector<8x256xf32>, i32 -> vector<8x256xf32>
    %54 = vector.extract_strided_slice %2 {offsets = [3, 0], sizes = [1, 256], strides = [1, 1]} : vector<9x256xf32> to vector<1x256xf32>
    %55 = vector.broadcast %54 : vector<1x256xf32> to vector<8x256xf32>
    %56 = arith.mulf %53, %55 : vector<8x256xf32>
    %c255_i32_13 = arith.constant 255 : i32
    %57 = tpu.dynamic_rotate %40 by %c255_i32_13 dim 1 : vector<8x256xf32>, i32 -> vector<8x256xf32>
    %58 = vector.extract_strided_slice %2 {offsets = [5, 0], sizes = [1, 256], strides = [1, 1]} : vector<9x256xf32> to vector<1x256xf32>
    %59 = vector.broadcast %58 : vector<1x256xf32> to vector<8x256xf32>
    %60 = arith.mulf %57, %59 : vector<8x256xf32>
    %c241_i32_14 = arith.constant 241 : i32
    %61 = tpu.dynamic_rotate %40 by %c241_i32_14 dim 1 : vector<8x256xf32>, i32 -> vector<8x256xf32>
    %62 = vector.extract_strided_slice %2 {offsets = [6, 0], sizes = [1, 256], strides = [1, 1]} : vector<9x256xf32> to vector<1x256xf32>
    %63 = vector.broadcast %62 : vector<1x256xf32> to vector<8x256xf32>
    %64 = arith.mulf %61, %63 : vector<8x256xf32>
    %c240_i32_15 = arith.constant 240 : i32
    %65 = tpu.dynamic_rotate %40 by %c240_i32_15 dim 1 : vector<8x256xf32>, i32 -> vector<8x256xf32>
    %66 = vector.extract_strided_slice %2 {offsets = [7, 0], sizes = [1, 256], strides = [1, 1]} : vector<9x256xf32> to vector<1x256xf32>
    %67 = vector.broadcast %66 : vector<1x256xf32> to vector<8x256xf32>
    %68 = arith.mulf %65, %67 : vector<8x256xf32>
    %c239_i32_16 = arith.constant 239 : i32
    %69 = tpu.dynamic_rotate %40 by %c239_i32_16 dim 1 : vector<8x256xf32>, i32 -> vector<8x256xf32>
    %70 = vector.extract_strided_slice %2 {offsets = [8, 0], sizes = [1, 256], strides = [1, 1]} : vector<9x256xf32> to vector<1x256xf32>
    %71 = vector.broadcast %70 : vector<1x256xf32> to vector<8x256xf32>
    %72 = arith.mulf %69, %71 : vector<8x256xf32>
    %73 = tpu.concatenate %44, %48, %52, %56, %40, %60, %64, %68, %72 in 0 : vector<8x256xf32>, vector<8x256xf32>, vector<8x256xf32>, vector<8x256xf32>, vector<8x256xf32>, vector<8x256xf32>, vector<8x256xf32>, vector<8x256xf32>, vector<8x256xf32> -> vector<72x256xf32>
    %cst_17 = arith.constant dense<0.000000e+00> : vector<8x256xf32>
    %74 = tpu.matmul %1, %73, %cst_17 {dimension_numbers = #tpu.dot_dimension_numbers<[1], [0], [0], [1], [0, 0, 1, 1], [], []>} : vector<8x72xf32>, vector<72x256xf32>, vector<8x256xf32> -> vector<8x256xf32>
    %75 = arith.addf %74, %4 : vector<8x256xf32>
    %cst_18 = arith.constant 0.000000e+00 : f32
    %76 = vector.broadcast %cst_18 : f32 to vector<8x256xf32>
    %77 = arith.maximumf %75, %76 : vector<8x256xf32>
    %c0_19 = arith.constant 0 : index
    %c0_20 = arith.constant 0 : index
    %c0_21 = arith.constant 0 : index
    %78 = vector.load %arg5[%c0_19, %c0_20, %c0_21] : memref<1x8x256xf32, #tpu.memory_space<vmem>>, vector<1x8x256xf32>
    %79 = vector.shape_cast %78 : vector<1x8x256xf32> to vector<8x256xf32>
    %80 = vector.shape_cast %77 : vector<8x256xf32> to vector<1x8x256xf32>
    tpu.vector_store %arg5[%c0_19, %c0_20, %c0_21], %80 {strides = array<i32>} : memref<1x8x256xf32, #tpu.memory_space<vmem>>, vector<1x8x256xf32>,
    return
  }
  func.func @transform_0(%arg0: i32) -> (i32, i32, i32) {
    %c0_i32 = arith.constant 0 : i32
    %c0_i32_0 = arith.constant 0 : i32
    %c0_i32_1 = arith.constant 0 : i32
    return %arg0, %c0_i32, %c0_i32_0 : i32, i32, i32
  }
  func.func @transform_1(%arg0: i32) -> (i32, i32) {
    %c0_i32 = arith.constant 0 : i32
    %c0_i32_0 = arith.constant 0 : i32
    %c0_i32_1 = arith.constant 0 : i32
    return %c0_i32, %c0_i32_0 : i32, i32
  }
  func.func @transform_2(%arg0: i32) -> (i32, i32) {
    %c0_i32 = arith.constant 0 : i32
    %c0_i32_0 = arith.constant 0 : i32
    %c0_i32_1 = arith.constant 0 : i32
    return %c0_i32, %c0_i32_0 : i32, i32
  }
  func.func @transform_3(%arg0: i32) -> (i32, i32) {
    %c0_i32 = arith.constant 0 : i32
    %c0_i32_0 = arith.constant 0 : i32
    %c0_i32_1 = arith.constant 0 : i32
    return %c0_i32, %c0_i32_0 : i32, i32
  }
  func.func @transform_4(%arg0: i32) -> (i32, i32, i32) {
    %c0_i32 = arith.constant 0 : i32
    %c0_i32_0 = arith.constant 0 : i32
    %c0_i32_1 = arith.constant 0 : i32
    return %arg0, %c0_i32, %c0_i32_0 : i32, i32, i32
  }
}

</mosaic_0001>

<bundles_post_ra>
// kernel: resnet_block.1
= control target key start
LH: loop header
LB: loop body
LE: loop exit
PB: predicated region body
PF: predicated region fallthrough
CT: control target
= control target key end

     0   :  { %s431_s17 = smov 16   ;;  %s432_s18 = smov 17   ;;  %v437_v2 = vmov 0.0   ;;  %v29_v3 = vlaneseq  ;;  %vm163_vm8 = vcmask 588800   ;;  %s729_s0 = inlined_call_operand.vmem [shape: f32[1,8,256], index: 0, kind: input, shape index: {}]   ;;  %s730_s3 = inlined_call_operand.vmem [shape: f32[9,256], index: 3, kind: input, shape index: {}]   ;;  %s731_s1 = inlined_call_operand.vmem [shape: f32[8,72], index: 1, kind: input, shape index: {}]   ;;  %s732_s2 = inlined_call_operand.vmem [shape: f32[8,72], index: 2, kind: input, shape index: {}]   ;;  %s733_s4 = inlined_call_operand.vmem [shape: f32[1,8,256], index: 4, kind: output, shape index: {}]  }
   0x1   :  { %v468_v0 = vld [vmem:[%s729_s0] sm:$0xff]  ;;  %v477_v1 = vld [vmem:[%s729_s0 + $0x8] sm:$0xff]  ;;  %s433_s21 = smov 15   ;;  %s434_s22 = smov 1   ;;  %231 = vmatprep.mubr.f32.mxu0 %v437_v2  ;;  %371 = vmatprep.mubr.f32.mxu1 %v437_v2 }
   0x2   :  { %44 = vrot.lane.b32.xlu1 %v468_v0, %s431_s17  ;;  %25 = vrot.lane.b32.xlu0 %v468_v0, %s432_s18  ;;  %s435_s0 = smov 127   ;;  %s436_s23 = smov 113   ;;  %v507_v4 = vshrl.u32 %v29_v3, 7  ;;  %v509_v5 = vand.u32 127, %v29_v3  ;;  %v516_v8 = vld [vmem:[%s730_s3] sm:$0xff]  ;;  %v521_v9 = vld [vmem:[%s730_s3 + $0x8] sm:$0xff] }
   0x3   :  { %s438_s24 = smov 112   ;;  %s439_s25 = smov 111  }
   0x4   :  { %v53_v6 = vsub.s32 1, %v507_v4  ;;  %v36_v7 = vsub.s32 0, %v507_v4  ;;  %vm48_vm0 = vcmp.lt.s32.totalorder %v509_v5, 16  ;;  %vm31_vm1 = vcmp.lt.s32.totalorder %v509_v5, 17 }
   0x5   :  { %v70_v18 = vsub.s32 2, %v507_v4  ;;  %v87_v19 = vsub.s32 3, %v507_v4  ;;  %vm65_vm2 = vcmp.lt.s32.totalorder %v509_v5, 15  ;;  %vm82_vm3 = vcmp.lt.s32.totalorder %v509_v5, 1 }
   0x6   :  { %46 = vrot.lane.b32.xlu1 %v477_v1, %s431_s17  ;;  %27 = vrot.lane.b32.xlu0 %v477_v1, %s432_s18  ;;  %v526_v12 = vrot.slane %v516_v8, %v53_v6  ;;  %v529_v13 = vrot.slane %v516_v8, %v36_v7  ;;  %v532_v14 = vrot.slane %v521_v9, %v36_v7  ;;  %v104_v32 = vsub.s32 5, %v507_v4 }
   0x7   :  { %v535_v15 = vrot.slane %v521_v9, %v53_v6  ;;  %v555_v33 = vrot.slane %v516_v8, %v70_v18  ;;  %v558_v34 = vrot.slane %v521_v9, %v70_v18  ;;  %v561_v35 = vrot.slane %v516_v8, %v87_v19 }
   0x8   :  { %v564_v36 = vrot.slane %v521_v9, %v87_v19  ;;  %vm99_vm4 = vcmp.lt.s32.totalorder %v509_v5, 127  ;;  %v576_v43 = vrot.slane %v516_v8, %v104_v32  ;;  %v579_v44 = vrot.slane %v521_v9, %v104_v32 }
   0x9   :  { %v121_v55 = vsub.s32 6, %v507_v4  ;;  %v138_v58 = vsub.s32 7, %v507_v4  ;;  %vm116_vm5 = vcmp.lt.s32.totalorder %v509_v5, 113  ;;  %vm133_vm6 = vcmp.lt.s32.totalorder %v509_v5, 112 }
   0xa   :  { %63 = vrot.lane.b32.xlu1 %v477_v1, %s433_s21  ;;  %61 = vrot.lane.b32.xlu0 %v468_v0, %s433_s21  ;;  %vm150_vm7 = vcmp.lt.s32.totalorder %v509_v5, 111 }
   0xb   :  { %v597_v63 = vrot.slane %v516_v8, %v121_v55  ;;  %v600_v2 = vrot.slane %v521_v9, %v121_v55  ;;  %v604_v3 = vrot.slane %v516_v8, %v138_v58  ;;  %v607_v4 = vrot.slane %v521_v9, %v138_v58 }
   0xe   :  { %80 = vrot.lane.b32.xlu1 %v477_v1, %s434_s22  ;;  %78 = vrot.lane.b32.xlu0 %v468_v0, %s434_s22 }
  0x12   :  { %97 = vrot.lane.b32.xlu1 %v477_v1, %s435_s0  ;;  %95 = vrot.lane.b32.xlu0 %v468_v0, %s435_s0 }
  0x16   :  { %114 = vrot.lane.b32.xlu1 %v477_v1, %s436_s23  ;;  %112 = vrot.lane.b32.xlu0 %v468_v0, %s436_s23 }
  0x1a   :  { %131 = vrot.lane.b32.xlu1 %v477_v1, %s438_s24  ;;  %129 = vrot.lane.b32.xlu0 %v468_v0, %s438_s24 }
  0x1e   :  { %148 = vrot.lane.b32.xlu1 %v477_v1, %s439_s25  ;;  %146 = vrot.lane.b32.xlu0 %v468_v0, %s439_s25 }
  0x74   :  { %v45_v10 = vpop.permute.xlu1 %44  ;;  %v26_v11 = vpop.permute.xlu0 %25 }
  0x78   :  { %v47_v16 = vpop.permute.xlu1 %46  ;;  %v28_v17 = vpop.permute.xlu0 %27 }
  0x79   :  { %v49_v20 = vsel %vm48_vm0, %v45_v10, %v47_v16  ;;  %v50_v21 = vsel %vm48_vm0, %v47_v16, %v45_v10  ;;  %v32_v22 = vsel %vm31_vm1, %v26_v11, %v28_v17  ;;  %v33_v23 = vsel %vm31_vm1, %v28_v17, %v26_v11 }
  0x7a   :  { %v59_v24 = vmul.f32 %v526_v12, %v50_v21  ;;  %v42_v25 = vmul.f32 %v529_v13, %v33_v23  ;;  %v43_v26 = vmul.f32 %v532_v14, %v32_v22  ;;  %v60_v27 = vmul.f32 %v535_v15, %v49_v20  ;;  %v625_v20 = vld [vmem:[%s730_s3 + $0x18] ss:$0 sm:$0xff]  ;;  %v630_v23 = vld [vmem:[%s730_s3 + $0x10] ss:$0 sm:$0xff] }
  0x7c   :  { %v64_v28 = vpop.permute.xlu1 %63  ;;  %v62_v29 = vpop.permute.xlu0 %61  ;;  %v390_v30 = vpack.c.bf16 %v60_v27, %v43_v26  ;;  %v392_v31 = vpack.c.bf16 %v59_v24, %v42_v25 }
  0x7d   :  { %v66_v37 = vsel %vm65_vm2, %v62_v29, %v64_v28  ;;  %v67_v38 = vsel %vm65_vm2, %v64_v28, %v62_v29 }
  0x7e   :  { %391 = vmatprep.subr.bf16.mxu0 %v390_v30  ;;  %v76_v45 = vmul.f32 %v555_v33, %v67_v38  ;;  %v77_v46 = vmul.f32 %v558_v34, %v66_v37  ;;  %v17_v30 = vld [vmem:[%s731_s1] sm:$0xff] }
  0x7f   :  { %393 = vmatpush1.bf16.msra.mxu0 %v392_v31 }
  0x80   :  { %v81_v39 = vpop.permute.xlu1 %80  ;;  %v79_v40 = vpop.permute.xlu0 %78 }
  0x81   :  { %v83_v41 = vsel %vm82_vm3, %v79_v40, %v81_v39  ;;  %v84_v42 = vsel %vm82_vm3, %v81_v39, %v79_v40 }
  0x82   :  { %v93_v47 = vmul.f32 %v561_v35, %v84_v42  ;;  %v94_v48 = vmul.f32 %v564_v36, %v83_v41 }
  0x84   :  { %v98_v49 = vpop.permute.xlu1 %97  ;;  %v96_v50 = vpop.permute.xlu0 %95  ;;  %v394_v51 = vpack.c.bf16 %v94_v48, %v77_v46  ;;  %v396_v52 = vpack.c.bf16 %v93_v47, %v76_v45 }
  0x85   :  { %v100_v53 = vsel %vm99_vm4, %v96_v50, %v98_v49  ;;  %v101_v54 = vsel %vm99_vm4, %v98_v49, %v96_v50 }
  0x86   :  { %v110_v56 = vmul.f32 %v576_v43, %v100_v53  ;;  %v111_v57 = vmul.f32 %v579_v44, %v101_v54  ;;  %395 = vmatprep.subr.bf16.mxu0 %v394_v51 }
  0x87   :  { %397 = vmatpush1.bf16.msra.mxu0 %v396_v52 }
  0x88   :  { %v115_v59 = vpop.permute.xlu1 %114  ;;  %v113_v60 = vpop.permute.xlu0 %112  ;;  %v398_v61 = vpack.c.bf16 %v111_v57, %v477_v1  ;;  %v400_v62 = vpack.c.bf16 %v110_v56, %v468_v0 }
  0x89   :  { %v117_v6 = vsel %vm116_vm5, %v113_v60, %v115_v59  ;;  %v118_v7 = vsel %vm116_vm5, %v115_v59, %v113_v60 }
  0x8a   :  { %399 = vmatprep.subr.bf16.mxu0 %v398_v61  ;;  %v127_v8 = vmul.f32 %v597_v63, %v117_v6  ;;  %v128_v9 = vmul.f32 %v600_v2, %v118_v7 }
  0x8b   :  { %401 = vmatpush1.bf16.msra.mxu0 %v400_v62 }
  0x8c   :  { %v132_v10 = vpop.permute.xlu1 %131  ;;  %v130_v11 = vpop.permute.xlu0 %129 }
  0x8d   :  { %v134_v16 = vsel %vm133_vm6, %v130_v11, %v132_v10  ;;  %v135_v17 = vsel %vm133_vm6, %v132_v10, %v130_v11 }
  0x8e   :  { %v144_v18 = vmul.f32 %v604_v3, %v134_v16  ;;  %v145_v19 = vmul.f32 %v607_v4, %v135_v17 }
  0x90   :  { %v149_v21 = vpop.permute.xlu1 %148  ;;  %v402_v22 = vpack.c.bf16 %v145_v19, %v128_v9  ;;  %v147_v24 = vpop.permute.xlu0 %146  ;;  %v404_v25 = vpack.c.bf16 %v144_v18, %v127_v8 }
  0x91   :  { %v151_v26 = vsel %vm150_vm7, %v147_v24, %v149_v21  ;;  %v152_v27 = vsel %vm150_vm7, %v149_v21, %v147_v24 }
  0x92   :  { %403 = vmatprep.subr.bf16.mxu0 %v402_v22  ;;  %v162_v28 = vmul.f32 %v625_v20, %v152_v27  ;;  %v161_v29 = vmul.f32 %v630_v23, %v151_v26 }
  0x93   :  { %405 = vmatpush1.bf16.msra.mxu0 %v404_v25 }
  0x94   :  { %183 = vmatprep.subr.mxu0 %v162_v28 }
  0x97   :  { %184 = vmatpush1.msra.mxu0 %v161_v29 }
  0x98   :  { %388 = vmatmul.mubr.msk.f32.vlgmr.msra.gmra.mrb[0].mxu0 %vm163_vm8, %v17_v30 }
 0x16b   :  { %v233_v31 = vpop.f32.mrb[0].mxu0 }
 0x16c   :  { %v642_v32 = vmax.f32 %v233_v31, 0.0  ;;  %v235_v37 = vpop.f32.mrb[1].mxu0 }
 0x16d   :  { %v239_v38 = vmax.f32 %v235_v37, 0.0 }
 0x16e   :  { %240 = vrot.lane.b32.xlu0 %v642_v32, %s432_s18 }
 0x16f   :  { %242 = vrot.lane.b32.xlu1 %v239_v38, %s432_s18 }
 0x172   :  { %248 = vrot.lane.b32.xlu0 %v642_v32, %s431_s17 }
 0x173   :  { %250 = vrot.lane.b32.xlu1 %v239_v38, %s431_s17 }
 0x176   :  { %256 = vrot.lane.b32.xlu0 %v642_v32, %s433_s21 }
 0x177   :  { %258 = vrot.lane.b32.xlu1 %v239_v38, %s433_s21 }
 0x17a   :  { %264 = vrot.lane.b32.xlu0 %v642_v32, %s434_s22 }
 0x17b   :  { %266 = vrot.lane.b32.xlu1 %v239_v38, %s434_s22 }
 0x17e   :  { %272 = vrot.lane.b32.xlu0 %v642_v32, %s435_s0 }
 0x17f   :  { %274 = vrot.lane.b32.xlu1 %v239_v38, %s435_s0 }
 0x182   :  { %280 = vrot.lane.b32.xlu0 %v642_v32, %s436_s23 }
 0x183   :  { %282 = vrot.lane.b32.xlu1 %v239_v38, %s436_s23 }
 0x186   :  { %288 = vrot.lane.b32.xlu0 %v642_v32, %s438_s24 }
 0x187   :  { %290 = vrot.lane.b32.xlu1 %v239_v38, %s438_s24 }
 0x18a   :  { %296 = vrot.lane.b32.xlu0 %v642_v32, %s439_s25 }
 0x18b   :  { %298 = vrot.lane.b32.xlu1 %v239_v38, %s439_s25 }
 0x1e0   :  { %v241_v39 = vpop.permute.xlu0 %240 }
 0x1e1   :  { %v243_v40 = vpop.permute.xlu1 %242 }
 0x1e2   :  { %v244_v41 = vsel %vm31_vm1, %v241_v39, %v243_v40  ;;  %v245_v42 = vsel %vm31_vm1, %v243_v40, %v241_v39 }
 0x1e3   :  { %v246_v49 = vmul.f32 %v245_v42, %v529_v13  ;;  %v247_v51 = vmul.f32 %v244_v41, %v532_v14 }
 0x1e4   :  { %v249_v45 = vpop.permute.xlu0 %248 }
 0x1e5   :  { %v251_v46 = vpop.permute.xlu1 %250 }
 0x1e6   :  { %v252_v47 = vsel %vm48_vm0, %v249_v45, %v251_v46  ;;  %v253_v48 = vsel %vm48_vm0, %v251_v46, %v249_v45 }
 0x1e7   :  { %v254_v50 = vmul.f32 %v253_v48, %v526_v12  ;;  %v255_v52 = vmul.f32 %v252_v47, %v535_v15 }
 0x1e8   :  { %v257_v53 = vpop.permute.xlu0 %256 }
 0x1e9   :  { %v259_v54 = vpop.permute.xlu1 %258  ;;  %v406_v55 = vpack.c.bf16 %v255_v52, %v247_v51  ;;  %v408_v56 = vpack.c.bf16 %v254_v50, %v246_v49 }
 0x1ea   :  { %v260_v57 = vsel %vm65_vm2, %v257_v53, %v259_v54  ;;  %v261_v58 = vsel %vm65_vm2, %v259_v54, %v257_v53 }
 0x1eb   :  { %407 = vmatprep.subr.bf16.mxu1 %v406_v55  ;;  %v262_v15 = vmul.f32 %v261_v58, %v555_v33  ;;  %v263_v60 = vmul.f32 %v260_v57, %v558_v34 }
 0x1ec   :  { %v265_v59 = vpop.permute.xlu0 %264  ;;  %409 = vmatpush1.bf16.msra.mxu1 %v408_v56 }
 0x1ed   :  { %v267_v13 = vpop.permute.xlu1 %266 }
 0x1ee   :  { %v268_v12 = vsel %vm82_vm3, %v265_v59, %v267_v13  ;;  %v269_v14 = vsel %vm82_vm3, %v267_v13, %v265_v59 }
 0x1ef   :  { %v270_v61 = vmul.f32 %v269_v14, %v561_v35  ;;  %v271_v62 = vmul.f32 %v268_v12, %v564_v36 }
 0x1f0   :  { %v273_v6 = vpop.permute.xlu0 %272 }
 0x1f1   :  { %v275_v7 = vpop.permute.xlu1 %274  ;;  %v410_v10 = vpack.c.bf16 %v271_v62, %v263_v60  ;;  %v412_v11 = vpack.c.bf16 %v270_v61, %v262_v15 }
 0x1f2   :  { %v276_v16 = vsel %vm99_vm4, %v273_v6, %v275_v7  ;;  %v277_v17 = vsel %vm99_vm4, %v275_v7, %v273_v6 }
 0x1f3   :  { %v278_v8 = vmul.f32 %v276_v16, %v576_v43  ;;  %v279_v33 = vmul.f32 %v277_v17, %v579_v44  ;;  %411 = vmatprep.subr.bf16.mxu1 %v410_v10 }
 0x1f4   :  { %v281_v34 = vpop.permute.xlu0 %280  ;;  %413 = vmatpush1.bf16.msra.mxu1 %v412_v11 }
 0x1f5   :  { %v283_v35 = vpop.permute.xlu1 %282  ;;  %v414_v9 = vpack.c.bf16 %v279_v33, %v239_v38  ;;  %v416_v36 = vpack.c.bf16 %v278_v8, %v642_v32 }
 0x1f6   :  { %v284_v18 = vsel %vm116_vm5, %v281_v34, %v283_v35  ;;  %v285_v19 = vsel %vm116_vm5, %v283_v35, %v281_v34 }
 0x1f7   :  { %415 = vmatprep.subr.bf16.mxu1 %v414_v9  ;;  %v286_v24 = vmul.f32 %v284_v18, %v597_v63  ;;  %v287_v25 = vmul.f32 %v285_v19, %v600_v2  ;;  %v18_v2 = vld [vmem:[%s732_s2] sm:$0xff] }
 0x1f8   :  { %v289_v21 = vpop.permute.xlu0 %288  ;;  %417 = vmatpush1.bf16.msra.mxu1 %v416_v36 }
 0x1f9   :  { %v291_v22 = vpop.permute.xlu1 %290 }
 0x1fa   :  { %v292_v43 = vsel %vm133_vm6, %v289_v21, %v291_v22  ;;  %v293_v44 = vsel %vm133_vm6, %v291_v22, %v289_v21 }
 0x1fb   :  { %v294_v26 = vmul.f32 %v292_v43, %v604_v3  ;;  %v295_v27 = vmul.f32 %v293_v44, %v607_v4 }
 0x1fc   :  { %v297_v28 = vpop.permute.xlu0 %296 }
 0x1fd   :  { %v299_v29 = vpop.permute.xlu1 %298  ;;  %v418_v30 = vpack.c.bf16 %v295_v27, %v287_v25  ;;  %v420_v31 = vpack.c.bf16 %v294_v26, %v286_v24 }
 0x1fe   :  { %v301_v32 = vsel %vm150_vm7, %v299_v29, %v297_v28  ;;  %v300_v37 = vsel %vm150_vm7, %v297_v28, %v299_v29 }
 0x1ff   :  { %v303_v38 = vmul.f32 %v625_v20, %v301_v32  ;;  %419 = vmatprep.subr.bf16.mxu1 %v418_v30  ;;  %v302_v63 = vmul.f32 %v630_v23, %v300_v37 }
 0x200   :  { %421 = vmatpush1.bf16.msra.mxu1 %v420_v31 }
 0x201   :  { %323 = vmatprep.subr.mxu1 %v303_v38 }
 0x204   :  { %324 = vmatpush1.msra.mxu1 %v302_v63 }
 0x205   :  { %389 = vmatmul.mubr.msk.f32.vlgmr.msra.gmra.mrb[0].mxu1 %vm163_vm8, %v18_v2 }
 0x2d8   :  { %v373_v3 = vpop.f32.mrb[0].mxu1 }
 0x2d9   :  { %v374_v4 = vadd.f32 %v373_v3, %v468_v0  ;;  %v375_v39 = vpop.f32.mrb[1].mxu1 }
 0x2da   :  { %v376_v5 = vadd.f32 %v375_v39, %v477_v1 }
 0x2db   :  { %v378_v40 = vmax.f32 %v374_v4, 0.0 }
 0x2dc   :  { %v379_v20 = vmax.f32 %v376_v5, 0.0 }
 0x2dd   :  { %380 = vst [vmem:[%s733_s4] sm:$0xff] %v378_v40 }
 0x2de   :  { %381 = vst [vmem:[%s733_s4 + $0x8] sm:$0xff] %v379_v20 }

</bundles_post_ra>
